<compile_context>
chip_gen: v6e
topology: v6e:2x2x1
jax: 0.10.0
libtpu: 0.0.40
codegen_flags: <defaults>
</compile_context>

<pallas_src>
import jax
import jax.numpy as jnp
from jax.experimental import pallas as pl
from jax.experimental.pallas import tpu as pltpu


def _conv1x1_kernel(x_ref, w_ref, o_ref):
    # x_ref: (C_in, HWp), w_ref: (C_outp, C_in), o_ref: (C_outp, HWp)
    # 1x1 conv == channel-mixing matmul on the MXU: out = W @ X.
    o_ref[...] = jnp.dot(
        w_ref[...], x_ref[...], preferred_element_type=jnp.float32
    ).astype(o_ref.dtype)


def _round_up(v, m):
    return ((v + m - 1) // m) * m


@jax.jit
def conv2d_1x1(x_nchw, weight_oi):
    """1x1 conv, stride 1, no bias.

    x_nchw:    (N, C_in, H, W) float32
    weight_oi: (C_out, C_in)   float32 (PyTorch Conv2d weight squeezed)
    returns    (N, C_out, H, W) float32
    """
    N, C_in, H, W = x_nchw.shape
    C_out = weight_oi.shape[0]
    HW = H * W

    # Lane-dense (last dim multiple of 128) and sublane-dense (multiple of 8)
    # padded extents -> unmasked in-kernel loads/stores.
    HWp = _round_up(HW, 128)
    C_outp = _round_up(C_out, 8)

    # NCHW -> (N, C_in, H*W): free reshape of the contiguous buffer, no transpose.
    x_mat = x_nchw.reshape(N, C_in, HW)
    if HWp != HW:
        x_mat = jnp.pad(x_mat, ((0, 0), (0, 0), (0, HWp - HW)))
    w = weight_oi
    if C_outp != C_out:
        w = jnp.pad(w, ((0, C_outp - C_out), (0, 0)))

    cost = pl.CostEstimate(
        flops=2 * N * C_outp * C_in * HWp,
        transcendentals=0,
        bytes_accessed=4 * (N * C_in * HWp + C_outp * C_in + N * C_outp * HWp),
    )

    if N == 1:
        # Gridless: whole problem (<1 MiB f32) is VMEM resident; no 1-point-grid
        # pipeline overhead, no double buffering.
        out_p = pl.pallas_call(
            _conv1x1_kernel,
            out_shape=jax.ShapeDtypeStruct((C_outp, HWp), jnp.float32),
            in_specs=[
                pl.BlockSpec(memory_space=pltpu.MemorySpace.VMEM),
                pl.BlockSpec(memory_space=pltpu.MemorySpace.VMEM),
            ],
            out_specs=pl.BlockSpec(memory_space=pltpu.MemorySpace.VMEM),
            cost_estimate=cost,
        )(x_mat[0], w)
        out_p = out_p[None]
    else:
        # Batch on a "parallel" grid axis: double-buffered DMA per image and
        # megacore sharding on v7x; weight block is identical every step.
        out_p = pl.pallas_call(
            _conv1x1_kernel,
            out_shape=jax.ShapeDtypeStruct((N, C_outp, HWp), jnp.float32),
            grid=(N,),
            in_specs=[
                pl.BlockSpec((None, C_in, HWp), lambda n: (n, 0, 0)),
                pl.BlockSpec((C_outp, C_in), lambda n: (0, 0)),
            ],
            out_specs=pl.BlockSpec((None, C_outp, HWp), lambda n: (n, 0, 0)),
            cost_estimate=cost,
            compiler_params=pltpu.CompilerParams(
                dimension_semantics=("parallel",)
            ),
        )(x_mat, w)

    # Drop padding and restore NCHW (slice + free reshape, fused by XLA).
    return out_p[:, :C_out, :HW].reshape(N, C_out, H, W)


if __name__ == "__main__":
    key = jax.random.PRNGKey(0)
    kx, kw, kx2 = jax.random.split(key, 3)

    # Shapes implied by the module: Conv2d(244, 244, 1x1), input [1, 244, 14, 14]
    N, C_in, H, W = 1, 244, 14, 14
    C_out = 244

    x = jax.random.normal(kx, (N, C_in, H, W), dtype=jnp.float32)
    # PyTorch weight shape (C_out, C_in, 1, 1), squeezed to (C_out, C_in).
    weight = jax.random.normal(kw, (C_out, C_in), dtype=jnp.float32) * 0.05

    out = conv2d_1x1(x, weight)
    out = jax.block_until_ready(out)

    ref = jnp.einsum("nchw,oc->nohw", x, weight)
    assert out.shape == (N, C_out, H, W)
    assert jnp.allclose(out, ref, atol=1e-3, rtol=1e-3)

    # Also exercise the N>1 grid path (future-proofing path from the review).
    x2 = jax.random.normal(kx2, (2, C_in, H, W), dtype=jnp.float32)
    out2 = jax.block_until_ready(conv2d_1x1(x2, weight))
    ref2 = jnp.einsum("nchw,oc->nohw", x2, weight)
    assert out2.shape == (2, C_out, H, W)
    assert jnp.allclose(out2, ref2, atol=1e-3, rtol=1e-3)

    print("KERNEL_OK")
</pallas_src>

<mosaic_0001>
module attributes {stable_mosaic.version = 11 : i64} {
  func.func @_conv1x1_kernel(%arg0: memref<244x256xf32, #tpu.memory_space<vmem>>, %arg1: memref<248x244xf32, #tpu.memory_space<vmem>>, %arg2: memref<248x256xf32, #tpu.memory_space<vmem>>) attributes {dimension_semantics = [], scalar_prefetch = 0 : i64, scratch_operands = 0 : i64, tpu.core_type = #tpu.core_type<tc>} {
    %c0 = arith.constant 0 : index
    %c0_0 = arith.constant 0 : index
    %0 = vector.load %arg1[%c0, %c0_0] : memref<248x244xf32, #tpu.memory_space<vmem>>, vector<248x244xf32>
    %c0_1 = arith.constant 0 : index
    %c0_2 = arith.constant 0 : index
    %1 = vector.load %arg0[%c0_1, %c0_2] : memref<244x256xf32, #tpu.memory_space<vmem>>, vector<244x256xf32>
    %cst = arith.constant dense<0.000000e+00> : vector<248x256xf32>
    %2 = tpu.matmul %0, %1, %cst {dimension_numbers = #tpu.dot_dimension_numbers<[1], [0], [0], [1], [0, 0, 1, 1], [], []>} : vector<248x244xf32>, vector<244x256xf32>, vector<248x256xf32> -> vector<248x256xf32>
    %c0_3 = arith.constant 0 : index
    %c0_4 = arith.constant 0 : index
    %3 = vector.load %arg2[%c0_3, %c0_4] : memref<248x256xf32, #tpu.memory_space<vmem>>, vector<248x256xf32>
    tpu.vector_store %arg2[%c0_3, %c0_4], %2 {strides = array<i32>} : memref<248x256xf32, #tpu.memory_space<vmem>>, vector<248x256xf32>,
    return
  }
}

</mosaic_0001>

<bundles_post_ra>
// kernel: conv2d_1x1.1
= control target key start
LH: loop header
LB: loop body
LE: loop exit
PB: predicated region body
PF: predicated region fallthrough
CT: control target
= control target key end

     0   :  { %vm229_vm0 = vcmask 1043456   ;;  %vm135_vm1 = vcmask 949248   ;;  %s1252_s0 = inlined_call_operand.vmem [shape: f32[244,256], index: 0, kind: input, shape index: {}]   ;;  %s1253_s1 = inlined_call_operand.vmem [shape: f32[248,244], index: 1, kind: input, shape index: {}]   ;;  %s1254_s2 = inlined_call_operand.vmem [shape: f32[248,256], index: 2, kind: output, shape index: {}]  }
   0x1   :  { %v104_v0 = vld [vmem:[%s1252_s0 + $0xf8] sm:$0xff]  ;;  %v103_v1 = vld [vmem:[%s1252_s0 + $0xf0] sm:$0xff]  ;;  %v102_v2 = vld [vmem:[%s1252_s0 + $0xe8] sm:$0xff] }
   0x2   :  { %236 = vmatprep.subr.mxu0 %v104_v0  ;;  %586 = vmatprep.subr.mxu1 %v104_v0  ;;  %v101_v3 = vld [vmem:[%s1252_s0 + $0xe0] sm:$0xff]  ;;  %v100_v4 = vld [vmem:[%s1252_s0 + $0xd8] sm:$0xff]  ;;  %v99_v5 = vld [vmem:[%s1252_s0 + $0xd0] sm:$0xff] }
   0x3   :  { %237 = vmatpush1.msra.mxu0 %v103_v1  ;;  %617 = vmatpush1.msra.mxu1 %v103_v1  ;;  %v98_v6 = vld [vmem:[%s1252_s0 + $0xc8] sm:$0xff]  ;;  %v97_v7 = vld [vmem:[%s1252_s0 + $0xc0] sm:$0xff]  ;;  %v96_v8 = vld [vmem:[%s1252_s0 + $0xb8] sm:$0xff] }
   0x4   :  { %238 = vmatprep.subr.mxu0 %v102_v2  ;;  %587 = vmatprep.subr.mxu1 %v102_v2  ;;  %v95_v9 = vld [vmem:[%s1252_s0 + $0xb0] sm:$0xff]  ;;  %v94_v10 = vld [vmem:[%s1252_s0 + $0xa8] sm:$0xff]  ;;  %v93_v11 = vld [vmem:[%s1252_s0 + $0xa0] sm:$0xff] }
   0x5   :  { %239 = vmatpush1.msra.mxu0 %v101_v3  ;;  %618 = vmatpush1.msra.mxu1 %v101_v3  ;;  %v92_v12 = vld [vmem:[%s1252_s0 + $0x98] sm:$0xff]  ;;  %v91_v13 = vld [vmem:[%s1252_s0 + $0x90] sm:$0xff]  ;;  %v90_v14 = vld [vmem:[%s1252_s0 + $0x88] sm:$0xff] }
   0x6   :  { %240 = vmatprep.subr.mxu0 %v100_v4  ;;  %588 = vmatprep.subr.mxu1 %v100_v4  ;;  %v89_v15 = vld [vmem:[%s1252_s0 + $0x80] sm:$0xff]  ;;  %v88_v16 = vld [vmem:[%s1252_s0 + $0x78] sm:$0xff]  ;;  %v87_v17 = vld [vmem:[%s1252_s0 + $0x70] sm:$0xff] }
   0x7   :  { %241 = vmatpush1.msra.mxu0 %v99_v5  ;;  %619 = vmatpush1.msra.mxu1 %v99_v5  ;;  %v86_v18 = vld [vmem:[%s1252_s0 + $0x68] sm:$0xff]  ;;  %v85_v19 = vld [vmem:[%s1252_s0 + $0x60] sm:$0xff]  ;;  %v84_v20 = vld [vmem:[%s1252_s0 + $0x58] sm:$0xff] }
   0x8   :  { %242 = vmatprep.subr.mxu0 %v98_v6  ;;  %589 = vmatprep.subr.mxu1 %v98_v6  ;;  %v83_v21 = vld [vmem:[%s1252_s0 + $0x50] sm:$0xff]  ;;  %v82_v22 = vld [vmem:[%s1252_s0 + $0x48] sm:$0xff]  ;;  %v81_v23 = vld [vmem:[%s1252_s0 + $0x40] sm:$0xff] }
   0x9   :  { %243 = vmatpush1.msra.mxu0 %v97_v7  ;;  %620 = vmatpush1.msra.mxu1 %v97_v7  ;;  %v80_v24 = vld [vmem:[%s1252_s0 + $0x38] sm:$0xff]  ;;  %v79_v25 = vld [vmem:[%s1252_s0 + $0x30] sm:$0xff]  ;;  %v78_v26 = vld [vmem:[%s1252_s0 + $0x28] sm:$0xff] }
   0xa   :  { %244 = vmatprep.subr.mxu0 %v96_v8  ;;  %590 = vmatprep.subr.mxu1 %v96_v8  ;;  %v77_v27 = vld [vmem:[%s1252_s0 + $0x20] sm:$0xff]  ;;  %v76_v28 = vld [vmem:[%s1252_s0 + $0x18] sm:$0xff]  ;;  %v75_v29 = vld [vmem:[%s1252_s0 + $0x10] sm:$0xff] }
   0xb   :  { %245 = vmatpush1.msra.mxu0 %v95_v9  ;;  %621 = vmatpush1.msra.mxu1 %v95_v9  ;;  %v74_v30 = vld [vmem:[%s1252_s0 + $0x8] sm:$0xff]  ;;  %v73_v31 = vld [vmem:[%s1252_s0] sm:$0xff]  ;;  %v132_v34 = vld [vmem:[%s1252_s0 + $0x1d8] sm:$0xff] }
   0xc   :  { %246 = vmatprep.subr.mxu0 %v94_v10  ;;  %591 = vmatprep.subr.mxu1 %v94_v10  ;;  %v134_v32 = vld [vmem:[%s1252_s0 + $0x1e8] sm:$0xf]  ;;  %v133_v33 = vld [vmem:[%s1252_s0 + $0x1e0] sm:$0xf]  ;;  %v131_v35 = vld [vmem:[%s1252_s0 + $0x1d0] sm:$0xff] }
   0xd   :  { %247 = vmatpush1.msra.mxu0 %v93_v11  ;;  %622 = vmatpush1.msra.mxu1 %v93_v11  ;;  %v130_v36 = vld [vmem:[%s1252_s0 + $0x1c8] sm:$0xff]  ;;  %v129_v37 = vld [vmem:[%s1252_s0 + $0x1c0] sm:$0xff]  ;;  %v128_v38 = vld [vmem:[%s1252_s0 + $0x1b8] sm:$0xff] }
   0xe   :  { %248 = vmatprep.subr.mxu0 %v92_v12  ;;  %592 = vmatprep.subr.mxu1 %v92_v12  ;;  %v127_v39 = vld [vmem:[%s1252_s0 + $0x1b0] sm:$0xff]  ;;  %v126_v40 = vld [vmem:[%s1252_s0 + $0x1a8] sm:$0xff]  ;;  %v125_v41 = vld [vmem:[%s1252_s0 + $0x1a0] sm:$0xff] }
   0xf   :  { %249 = vmatpush1.msra.mxu0 %v91_v13  ;;  %623 = vmatpush1.msra.mxu1 %v91_v13  ;;  %v124_v42 = vld [vmem:[%s1252_s0 + $0x198] sm:$0xff]  ;;  %v123_v43 = vld [vmem:[%s1252_s0 + $0x190] sm:$0xff]  ;;  %v122_v44 = vld [vmem:[%s1252_s0 + $0x188] sm:$0xff] }
  0x10   :  { %250 = vmatprep.subr.mxu0 %v90_v14  ;;  %593 = vmatprep.subr.mxu1 %v90_v14  ;;  %v121_v45 = vld [vmem:[%s1252_s0 + $0x180] sm:$0xff]  ;;  %v120_v46 = vld [vmem:[%s1252_s0 + $0x178] sm:$0xff]  ;;  %v119_v47 = vld [vmem:[%s1252_s0 + $0x170] sm:$0xff] }
  0x11   :  { %251 = vmatpush1.msra.mxu0 %v89_v15  ;;  %624 = vmatpush1.msra.mxu1 %v89_v15  ;;  %v118_v48 = vld [vmem:[%s1252_s0 + $0x168] sm:$0xff]  ;;  %v117_v49 = vld [vmem:[%s1252_s0 + $0x160] sm:$0xff]  ;;  %v116_v50 = vld [vmem:[%s1252_s0 + $0x158] sm:$0xff] }
  0x12   :  { %252 = vmatprep.subr.mxu0 %v88_v16  ;;  %594 = vmatprep.subr.mxu1 %v88_v16  ;;  %v115_v51 = vld [vmem:[%s1252_s0 + $0x150] sm:$0xff]  ;;  %v114_v52 = vld [vmem:[%s1252_s0 + $0x148] sm:$0xff]  ;;  %v113_v53 = vld [vmem:[%s1252_s0 + $0x140] sm:$0xff] }
  0x13   :  { %253 = vmatpush1.msra.mxu0 %v87_v17  ;;  %625 = vmatpush1.msra.mxu1 %v87_v17  ;;  %v112_v54 = vld [vmem:[%s1252_s0 + $0x138] sm:$0xff]  ;;  %v111_v55 = vld [vmem:[%s1252_s0 + $0x130] sm:$0xff]  ;;  %v110_v56 = vld [vmem:[%s1252_s0 + $0x128] sm:$0xff] }
  0x14   :  { %254 = vmatprep.subr.mxu0 %v86_v18  ;;  %595 = vmatprep.subr.mxu1 %v86_v18  ;;  %v109_v57 = vld [vmem:[%s1252_s0 + $0x120] sm:$0xff]  ;;  %v108_v58 = vld [vmem:[%s1252_s0 + $0x118] sm:$0xff]  ;;  %v107_v59 = vld [vmem:[%s1252_s0 + $0x110] sm:$0xff] }
  0x15   :  { %255 = vmatpush1.msra.mxu0 %v85_v19  ;;  %626 = vmatpush1.msra.mxu1 %v85_v19  ;;  %v106_v60 = vld [vmem:[%s1252_s0 + $0x108] sm:$0xff]  ;;  %v105_v62 = vld [vmem:[%s1252_s0 + $0x100] sm:$0xff]  ;;  %v14_v1 = vld [vmem:[%s1253_s1 + $0x18] sm:$0xff] }
  0x16   :  { %256 = vmatprep.subr.mxu0 %v84_v20  ;;  %596 = vmatprep.subr.mxu1 %v84_v20  ;;  %v12_v61 = vld [vmem:[%s1253_s1 + $0x8] sm:$0xff]  ;;  %v11_v63 = vld [vmem:[%s1253_s1] sm:$0xff]  ;;  %v46_v3 = vld [vmem:[%s1253_s1 + $0x118] sm:$0xff] }
  0x17   :  { %257 = vmatpush1.msra.mxu0 %v83_v21  ;;  %627 = vmatpush1.msra.mxu1 %v83_v21  ;;  %v44_v0 = vld [vmem:[%s1253_s1 + $0x108] sm:$0xff]  ;;  %v43_v2 = vld [vmem:[%s1253_s1 + $0x100] sm:$0xff]  ;;  %v13_v4 = vld [vmem:[%s1253_s1 + $0x10] sm:$0xff] }
  0x18   :  { %258 = vmatprep.subr.mxu0 %v82_v22  ;;  %597 = vmatprep.subr.mxu1 %v82_v22  ;;  %v16_v5 = vld [vmem:[%s1253_s1 + $0x28] sm:$0xff]  ;;  %v45_v6 = vld [vmem:[%s1253_s1 + $0x110] sm:$0xff]  ;;  %v15_v8 = vld [vmem:[%s1253_s1 + $0x20] sm:$0xff] }
  0x19   :  { %259 = vmatpush1.msra.mxu0 %v81_v23  ;;  %628 = vmatpush1.msra.mxu1 %v81_v23  ;;  %v48_v7 = vld [vmem:[%s1253_s1 + $0x128] sm:$0xff]  ;;  %v18_v9 = vld [vmem:[%s1253_s1 + $0x38] sm:$0xff]  ;;  %v47_v10 = vld [vmem:[%s1253_s1 + $0x120] sm:$0xff] }
  0x1a   :  { %260 = vmatprep.subr.mxu0 %v80_v24  ;;  %598 = vmatprep.subr.mxu1 %v80_v24  ;;  %v50_v11 = vld [vmem:[%s1253_s1 + $0x138] sm:$0xff]  ;;  %v17_v12 = vld [vmem:[%s1253_s1 + $0x30] sm:$0xff]  ;;  %v20_v13 = vld [vmem:[%s1253_s1 + $0x48] sm:$0xff] }
  0x1b   :  { %261 = vmatpush1.msra.mxu0 %v79_v25  ;;  %629 = vmatpush1.msra.mxu1 %v79_v25  ;;  %v49_v14 = vld [vmem:[%s1253_s1 + $0x130] sm:$0xff]  ;;  %v52_v15 = vld [vmem:[%s1253_s1 + $0x148] sm:$0xff]  ;;  %v19_v16 = vld [vmem:[%s1253_s1 + $0x40] sm:$0xff] }
  0x1c   :  { %262 = vmatprep.subr.mxu0 %v78_v26  ;;  %599 = vmatprep.subr.mxu1 %v78_v26  ;;  %v22_v17 = vld [vmem:[%s1253_s1 + $0x58] sm:$0xff]  ;;  %v51_v18 = vld [vmem:[%s1253_s1 + $0x140] sm:$0xff]  ;;  %v21_v20 = vld [vmem:[%s1253_s1 + $0x50] sm:$0xff] }
  0x1d   :  { %263 = vmatpush1.msra.mxu0 %v77_v27  ;;  %630 = vmatpush1.msra.mxu1 %v77_v27  ;;  %v54_v19 = vld [vmem:[%s1253_s1 + $0x158] sm:$0xff]  ;;  %v24_v21 = vld [vmem:[%s1253_s1 + $0x68] sm:$0xff]  ;;  %v53_v22 = vld [vmem:[%s1253_s1 + $0x150] sm:$0xff] }
  0x1e   :  { %264 = vmatprep.subr.mxu0 %v76_v28  ;;  %600 = vmatprep.subr.mxu1 %v76_v28  ;;  %v56_v23 = vld [vmem:[%s1253_s1 + $0x168] sm:$0xff]  ;;  %v23_v24 = vld [vmem:[%s1253_s1 + $0x60] sm:$0xff]  ;;  %v26_v25 = vld [vmem:[%s1253_s1 + $0x78] sm:$0xff] }
  0x1f   :  { %265 = vmatpush1.msra.mxu0 %v75_v29  ;;  %631 = vmatpush1.msra.mxu1 %v75_v29  ;;  %v55_v26 = vld [vmem:[%s1253_s1 + $0x160] sm:$0xff]  ;;  %v58_v27 = vld [vmem:[%s1253_s1 + $0x178] sm:$0xff]  ;;  %v25_v28 = vld [vmem:[%s1253_s1 + $0x70] sm:$0xff] }
  0x20   :  { %266 = vmatprep.subr.mxu0 %v74_v30  ;;  %601 = vmatprep.subr.mxu1 %v74_v30  ;;  %v28_v29 = vld [vmem:[%s1253_s1 + $0x88] sm:$0xff]  ;;  %v57_v30 = vld [vmem:[%s1253_s1 + $0x170] sm:$0xff] }
  0x21   :  { %267 = vmatpush1.msra.mxu0 %v73_v31  ;;  %632 = vmatpush1.msra.mxu1 %v73_v31  ;;  %v60_v31 = vld [vmem:[%s1253_s1 + $0x188] sm:$0xff] }
  0x22   :  { %553 = vmatprep.subr.msk.mxu0 %vm229_vm0, %v134_v32  ;;  %602 = vmatprep.subr.msk.mxu1 %vm229_vm0, %v134_v32  ;;  %v27_v32 = vld [vmem:[%s1253_s1 + $0x80] sm:$0xff] }
  0x23   :  { %554 = vmatpush2.msk.msra.mxu0 %vm229_vm0, %v133_v33  ;;  %633 = vmatpush2.msk.msra.mxu1 %vm229_vm0, %v133_v33  ;;  %v30_v33 = vld [vmem:[%s1253_s1 + $0x98] sm:$0xff] }
  0x24   :  { %272 = vmatprep.subr.mxu0 %v132_v34  ;;  %603 = vmatprep.subr.mxu1 %v132_v34  ;;  %v59_v34 = vld [vmem:[%s1253_s1 + $0x180] sm:$0xff] }
  0x25   :  { %273 = vmatpush2.msra.mxu0 %v131_v35  ;;  %634 = vmatpush2.msra.mxu1 %v131_v35  ;;  %v62_v35 = vld [vmem:[%s1253_s1 + $0x198] sm:$0xff] }
  0x26   :  { %274 = vmatprep.subr.mxu0 %v130_v36  ;;  %604 = vmatprep.subr.mxu1 %v130_v36  ;;  %v29_v36 = vld [vmem:[%s1253_s1 + $0x90] sm:$0xff] }
  0x27   :  { %275 = vmatpush2.msra.mxu0 %v129_v37  ;;  %635 = vmatpush2.msra.mxu1 %v129_v37  ;;  %v32_v37 = vld [vmem:[%s1253_s1 + $0xa8] sm:$0xff] }
  0x28   :  { %276 = vmatprep.subr.mxu0 %v128_v38  ;;  %605 = vmatprep.subr.mxu1 %v128_v38  ;;  %v61_v38 = vld [vmem:[%s1253_s1 + $0x190] sm:$0xff] }
  0x29   :  { %277 = vmatpush2.msra.mxu0 %v127_v39  ;;  %636 = vmatpush2.msra.mxu1 %v127_v39  ;;  %v64_v39 = vld [vmem:[%s1253_s1 + $0x1a8] sm:$0xff] }
  0x2a   :  { %278 = vmatprep.subr.mxu0 %v126_v40  ;;  %606 = vmatprep.subr.mxu1 %v126_v40  ;;  %v31_v40 = vld [vmem:[%s1253_s1 + $0xa0] sm:$0xff] }
  0x2b   :  { %279 = vmatpush2.msra.mxu0 %v125_v41  ;;  %637 = vmatpush2.msra.mxu1 %v125_v41  ;;  %v34_v41 = vld [vmem:[%s1253_s1 + $0xb8] sm:$0xff] }
  0x2c   :  { %280 = vmatprep.subr.mxu0 %v124_v42  ;;  %607 = vmatprep.subr.mxu1 %v124_v42  ;;  %v63_v42 = vld [vmem:[%s1253_s1 + $0x1a0] sm:$0xff] }
  0x2d   :  { %281 = vmatpush2.msra.mxu0 %v123_v43  ;;  %638 = vmatpush2.msra.mxu1 %v123_v43  ;;  %v66_v43 = vld [vmem:[%s1253_s1 + $0x1b8] sm:$0xff] }
  0x2e   :  { %282 = vmatprep.subr.mxu0 %v122_v44  ;;  %608 = vmatprep.subr.mxu1 %v122_v44  ;;  %v33_v44 = vld [vmem:[%s1253_s1 + $0xb0] sm:$0xff] }
  0x2f   :  { %283 = vmatpush2.msra.mxu0 %v121_v45  ;;  %639 = vmatpush2.msra.mxu1 %v121_v45  ;;  %v36_v45 = vld [vmem:[%s1253_s1 + $0xc8] sm:$0xff] }
  0x30   :  { %284 = vmatprep.subr.mxu0 %v120_v46  ;;  %609 = vmatprep.subr.mxu1 %v120_v46  ;;  %v65_v46 = vld [vmem:[%s1253_s1 + $0x1b0] sm:$0xff] }
  0x31   :  { %285 = vmatpush2.msra.mxu0 %v119_v47  ;;  %640 = vmatpush2.msra.mxu1 %v119_v47  ;;  %v68_v47 = vld [vmem:[%s1253_s1 + $0x1c8] sm:$0xff] }
  0x32   :  { %286 = vmatprep.subr.mxu0 %v118_v48  ;;  %610 = vmatprep.subr.mxu1 %v118_v48  ;;  %v35_v48 = vld [vmem:[%s1253_s1 + $0xc0] sm:$0xff] }
  0x33   :  { %287 = vmatpush2.msra.mxu0 %v117_v49  ;;  %641 = vmatpush2.msra.mxu1 %v117_v49  ;;  %v38_v49 = vld [vmem:[%s1253_s1 + $0xd8] sm:$0xff] }
  0x34   :  { %288 = vmatprep.subr.mxu0 %v116_v50  ;;  %611 = vmatprep.subr.mxu1 %v116_v50  ;;  %v67_v50 = vld [vmem:[%s1253_s1 + $0x1c0] sm:$0xff] }
  0x35   :  { %289 = vmatpush2.msra.mxu0 %v115_v51  ;;  %642 = vmatpush2.msra.mxu1 %v115_v51  ;;  %v70_v51 = vld [vmem:[%s1253_s1 + $0x1d8] sm:$0xff] }
  0x36   :  { %290 = vmatprep.subr.mxu0 %v114_v52  ;;  %612 = vmatprep.subr.mxu1 %v114_v52  ;;  %v37_v52 = vld [vmem:[%s1253_s1 + $0xd0] sm:$0xff] }
  0x37   :  { %291 = vmatpush2.msra.mxu0 %v113_v53  ;;  %643 = vmatpush2.msra.mxu1 %v113_v53  ;;  %v40_v53 = vld [vmem:[%s1253_s1 + $0xe8] sm:$0xff] }
  0x38   :  { %292 = vmatprep.subr.mxu0 %v112_v54  ;;  %613 = vmatprep.subr.mxu1 %v112_v54  ;;  %v69_v54 = vld [vmem:[%s1253_s1 + $0x1d0] sm:$0xff] }
  0x39   :  { %293 = vmatpush2.msra.mxu0 %v111_v55  ;;  %644 = vmatpush2.msra.mxu1 %v111_v55  ;;  %v72_v55 = vld [vmem:[%s1253_s1 + $0x1e8] sm:$0xff] }
  0x3a   :  { %294 = vmatprep.subr.mxu0 %v110_v56  ;;  %614 = vmatprep.subr.mxu1 %v110_v56  ;;  %v39_v56 = vld [vmem:[%s1253_s1 + $0xe0] sm:$0xff] }
  0x3b   :  { %295 = vmatpush2.msra.mxu0 %v109_v57  ;;  %645 = vmatpush2.msra.mxu1 %v109_v57  ;;  %v42_v57 = vld [vmem:[%s1253_s1 + $0xf8] sm:$0xff] }
  0x3c   :  { %296 = vmatprep.subr.mxu0 %v108_v58  ;;  %615 = vmatprep.subr.mxu1 %v108_v58  ;;  %v71_v58 = vld [vmem:[%s1253_s1 + $0x1e0] sm:$0xff] }
  0x3d   :  { %297 = vmatpush2.msra.mxu0 %v107_v59  ;;  %646 = vmatpush2.msra.mxu1 %v107_v59  ;;  %v41_v59 = vld [vmem:[%s1253_s1 + $0xf0] sm:$0xff] }
  0x3e   :  { %298 = vmatprep.subr.mxu0 %v106_v60  ;;  %555 = vmatprep.mubr.msk.f32.mxu0 %vm135_vm1, %v12_v61 }
  0x3f   :  { %299 = vmatpush2.msra.mxu0 %v105_v62  ;;  %616 = vmatprep.subr.mxu1 %v106_v60 }
  0x40   :  { %301 = vmatmul.mubr.f32.vlgmr.msra.gmra.mxu0 %v11_v63  ;;  %647 = vmatpush2.msra.mxu1 %v105_v62 }
  0x41   :  { %571 = vmatprep.mubr.msk.f32.mxu1 %vm135_vm1, %v44_v0  ;;  %556 = vmatprep.mubr.msk.f32.mxu0 %vm135_vm1, %v14_v1 }
  0x42   :  { %397 = vmatmul.mubr.f32.vlgmr.msra.gmra.mxu1 %v43_v2 }
  0x43   :  { %572 = vmatprep.mubr.msk.f32.mxu1 %vm135_vm1, %v46_v3 }
  0x44   :  { %307 = vmatmul.mubr.f32.gmra.mxu0 %v13_v4 }
  0x45   :  { %557 = vmatprep.mubr.msk.f32.mxu0 %vm135_vm1, %v16_v5 }
  0x46   :  { %403 = vmatmul.mubr.f32.gmra.mxu1 %v45_v6 }
  0x47   :  { %573 = vmatprep.mubr.msk.f32.mxu1 %vm135_vm1, %v48_v7 }
  0x48   :  { %313 = vmatmul.mubr.f32.gmra.mxu0 %v15_v8 }
  0x49   :  { %558 = vmatprep.mubr.msk.f32.mxu0 %vm135_vm1, %v18_v9 }
  0x4a   :  { %409 = vmatmul.mubr.f32.gmra.mxu1 %v47_v10 }
  0x4b   :  { %574 = vmatprep.mubr.msk.f32.mxu1 %vm135_vm1, %v50_v11 }
  0x4c   :  { %319 = vmatmul.mubr.f32.gmra.mxu0 %v17_v12 }
  0x4d   :  { %559 = vmatprep.mubr.msk.f32.mxu0 %vm135_vm1, %v20_v13 }
  0x4e   :  { %415 = vmatmul.mubr.f32.gmra.mxu1 %v49_v14 }
  0x4f   :  { %575 = vmatprep.mubr.msk.f32.mxu1 %vm135_vm1, %v52_v15 }
  0x50   :  { %325 = vmatmul.mubr.f32.gmra.mxu0 %v19_v16 }
  0x51   :  { %560 = vmatprep.mubr.msk.f32.mxu0 %vm135_vm1, %v22_v17 }
  0x52   :  { %421 = vmatmul.mubr.f32.gmra.mxu1 %v51_v18 }
  0x53   :  { %576 = vmatprep.mubr.msk.f32.mxu1 %vm135_vm1, %v54_v19 }
  0x54   :  { %331 = vmatmul.mubr.f32.gmra.mxu0 %v21_v20 }
  0x55   :  { %561 = vmatprep.mubr.msk.f32.mxu0 %vm135_vm1, %v24_v21 }
  0x56   :  { %427 = vmatmul.mubr.f32.gmra.mxu1 %v53_v22 }
  0x57   :  { %577 = vmatprep.mubr.msk.f32.mxu1 %vm135_vm1, %v56_v23 }
  0x58   :  { %337 = vmatmul.mubr.f32.gmra.mxu0 %v23_v24 }
  0x59   :  { %562 = vmatprep.mubr.msk.f32.mxu0 %vm135_vm1, %v26_v25 }
  0x5a   :  { %433 = vmatmul.mubr.f32.gmra.mxu1 %v55_v26 }
  0x5b   :  { %578 = vmatprep.mubr.msk.f32.mxu1 %vm135_vm1, %v58_v27 }
  0x5c   :  { %343 = vmatmul.mubr.f32.gmra.mxu0 %v25_v28 }
  0x5d   :  { %563 = vmatprep.mubr.msk.f32.mxu0 %vm135_vm1, %v28_v29 }
  0x5e   :  { %439 = vmatmul.mubr.f32.gmra.mxu1 %v57_v30 }
  0x5f   :  { %579 = vmatprep.mubr.msk.f32.mxu1 %vm135_vm1, %v60_v31 }
  0x60   :  { %349 = vmatmul.mubr.f32.gmra.mxu0 %v27_v32 }
  0x61   :  { %564 = vmatprep.mubr.msk.f32.mxu0 %vm135_vm1, %v30_v33 }
  0x62   :  { %445 = vmatmul.mubr.f32.gmra.mxu1 %v59_v34 }
  0x63   :  { %580 = vmatprep.mubr.msk.f32.mxu1 %vm135_vm1, %v62_v35 }
  0x64   :  { %355 = vmatmul.mubr.f32.gmra.mxu0 %v29_v36 }
  0x65   :  { %565 = vmatprep.mubr.msk.f32.mxu0 %vm135_vm1, %v32_v37 }
  0x66   :  { %451 = vmatmul.mubr.f32.gmra.mxu1 %v61_v38 }
  0x67   :  { %581 = vmatprep.mubr.msk.f32.mxu1 %vm135_vm1, %v64_v39 }
  0x68   :  { %361 = vmatmul.mubr.f32.gmra.mxu0 %v31_v40 }
  0x69   :  { %566 = vmatprep.mubr.msk.f32.mxu0 %vm135_vm1, %v34_v41 }
  0x6a   :  { %457 = vmatmul.mubr.f32.gmra.mxu1 %v63_v42 }
  0x6b   :  { %582 = vmatprep.mubr.msk.f32.mxu1 %vm135_vm1, %v66_v43 }
  0x6c   :  { %367 = vmatmul.mubr.f32.gmra.mxu0 %v33_v44 }
  0x6d   :  { %567 = vmatprep.mubr.msk.f32.mxu0 %vm135_vm1, %v36_v45 }
  0x6e   :  { %463 = vmatmul.mubr.f32.gmra.mxu1 %v65_v46 }
  0x6f   :  { %583 = vmatprep.mubr.msk.f32.mxu1 %vm135_vm1, %v68_v47 }
  0x70   :  { %373 = vmatmul.mubr.f32.gmra.mxu0 %v35_v48 }
  0x71   :  { %568 = vmatprep.mubr.msk.f32.mxu0 %vm135_vm1, %v38_v49 }
  0x72   :  { %469 = vmatmul.mubr.f32.gmra.mxu1 %v67_v50 }
  0x73   :  { %584 = vmatprep.mubr.msk.f32.mxu1 %vm135_vm1, %v70_v51 }
  0x74   :  { %379 = vmatmul.mubr.f32.gmra.mxu0 %v37_v52 }
  0x75   :  { %569 = vmatprep.mubr.msk.f32.mxu0 %vm135_vm1, %v40_v53 }
  0x76   :  { %475 = vmatmul.mubr.f32.gmra.mxu1 %v69_v54 }
  0x77   :  { %585 = vmatprep.mubr.msk.f32.mxu1 %vm135_vm1, %v72_v55 }
  0x78   :  { %385 = vmatmul.mubr.f32.gmra.mxu0 %v39_v56 }
  0x79   :  { %570 = vmatprep.mubr.msk.f32.mxu0 %vm135_vm1, %v42_v57 }
  0x7a   :  { %481 = vmatmul.mubr.f32.gmra.mxu1 %v71_v58 }
  0x7c   :  { %391 = vmatmul.mubr.f32.gmra.mxu0 %v41_v59 }
 0x100   :  { %v302_v60 = vpop.f32.mrf.mxu0 }
 0x101   :  { %487 = vst [vmem:[%s1254_s2] sm:$0xff] %v302_v60 }
 0x102   :  { %v304_v61 = vpop.f32.mrf.mxu0  ;;  %v398_v62 = vpop.f32.mrf.mxu1 }
 0x103   :  { %488 = vst [vmem:[%s1254_s2 + $0x8] sm:$0xff] %v304_v61  ;;  %519 = vst [vmem:[%s1254_s2 + $0x100] sm:$0xff] %v398_v62 }
 0x104   :  { %v308_v63 = vpop.f32.mrf.mxu0  ;;  %v400_v0 = vpop.f32.mrf.mxu1 }
 0x105   :  { %489 = vst [vmem:[%s1254_s2 + $0x10] sm:$0xff] %v308_v63  ;;  %520 = vst [vmem:[%s1254_s2 + $0x108] sm:$0xff] %v400_v0 }
 0x106   :  { %v310_v1 = vpop.f32.mrf.mxu0  ;;  %v404_v2 = vpop.f32.mrf.mxu1 }
 0x107   :  { %490 = vst [vmem:[%s1254_s2 + $0x18] sm:$0xff] %v310_v1  ;;  %521 = vst [vmem:[%s1254_s2 + $0x110] sm:$0xff] %v404_v2 }
 0x108   :  { %v314_v3 = vpop.f32.mrf.mxu0  ;;  %v406_v4 = vpop.f32.mrf.mxu1 }
 0x109   :  { %491 = vst [vmem:[%s1254_s2 + $0x20] sm:$0xff] %v314_v3  ;;  %522 = vst [vmem:[%s1254_s2 + $0x118] sm:$0xff] %v406_v4 }
 0x10a   :  { %v316_v5 = vpop.f32.mrf.mxu0  ;;  %v410_v6 = vpop.f32.mrf.mxu1 }
 0x10b   :  { %492 = vst [vmem:[%s1254_s2 + $0x28] sm:$0xff] %v316_v5  ;;  %523 = vst [vmem:[%s1254_s2 + $0x120] sm:$0xff] %v410_v6 }
 0x10c   :  { %v320_v7 = vpop.f32.mrf.mxu0  ;;  %v412_v8 = vpop.f32.mrf.mxu1 }
 0x10d   :  { %493 = vst [vmem:[%s1254_s2 + $0x30] sm:$0xff] %v320_v7  ;;  %524 = vst [vmem:[%s1254_s2 + $0x128] sm:$0xff] %v412_v8 }
 0x10e   :  { %v322_v9 = vpop.f32.mrf.mxu0  ;;  %v416_v10 = vpop.f32.mrf.mxu1 }
 0x10f   :  { %494 = vst [vmem:[%s1254_s2 + $0x38] sm:$0xff] %v322_v9  ;;  %525 = vst [vmem:[%s1254_s2 + $0x130] sm:$0xff] %v416_v10 }
 0x110   :  { %v326_v11 = vpop.f32.mrf.mxu0  ;;  %v418_v12 = vpop.f32.mrf.mxu1 }
 0x111   :  { %495 = vst [vmem:[%s1254_s2 + $0x40] sm:$0xff] %v326_v11  ;;  %526 = vst [vmem:[%s1254_s2 + $0x138] sm:$0xff] %v418_v12 }
 0x112   :  { %v328_v13 = vpop.f32.mrf.mxu0  ;;  %v422_v14 = vpop.f32.mrf.mxu1 }
 0x113   :  { %496 = vst [vmem:[%s1254_s2 + $0x48] sm:$0xff] %v328_v13  ;;  %527 = vst [vmem:[%s1254_s2 + $0x140] sm:$0xff] %v422_v14 }
 0x114   :  { %v332_v15 = vpop.f32.mrf.mxu0  ;;  %v424_v16 = vpop.f32.mrf.mxu1 }
 0x115   :  { %497 = vst [vmem:[%s1254_s2 + $0x50] sm:$0xff] %v332_v15  ;;  %528 = vst [vmem:[%s1254_s2 + $0x148] sm:$0xff] %v424_v16 }
 0x116   :  { %v334_v17 = vpop.f32.mrf.mxu0  ;;  %v428_v18 = vpop.f32.mrf.mxu1 }
 0x117   :  { %498 = vst [vmem:[%s1254_s2 + $0x58] sm:$0xff] %v334_v17  ;;  %529 = vst [vmem:[%s1254_s2 + $0x150] sm:$0xff] %v428_v18 }
 0x118   :  { %v338_v19 = vpop.f32.mrf.mxu0  ;;  %v430_v20 = vpop.f32.mrf.mxu1 }
 0x119   :  { %499 = vst [vmem:[%s1254_s2 + $0x60] sm:$0xff] %v338_v19  ;;  %530 = vst [vmem:[%s1254_s2 + $0x158] sm:$0xff] %v430_v20 }
 0x11a   :  { %v340_v21 = vpop.f32.mrf.mxu0  ;;  %v434_v22 = vpop.f32.mrf.mxu1 }
 0x11b   :  { %500 = vst [vmem:[%s1254_s2 + $0x68] sm:$0xff] %v340_v21  ;;  %531 = vst [vmem:[%s1254_s2 + $0x160] sm:$0xff] %v434_v22 }
 0x11c   :  { %v344_v23 = vpop.f32.mrf.mxu0  ;;  %v436_v24 = vpop.f32.mrf.mxu1 }
 0x11d   :  { %501 = vst [vmem:[%s1254_s2 + $0x70] sm:$0xff] %v344_v23  ;;  %532 = vst [vmem:[%s1254_s2 + $0x168] sm:$0xff] %v436_v24 }
 0x11e   :  { %v346_v25 = vpop.f32.mrf.mxu0  ;;  %v440_v26 = vpop.f32.mrf.mxu1 }
 0x11f   :  { %502 = vst [vmem:[%s1254_s2 + $0x78] sm:$0xff] %v346_v25  ;;  %533 = vst [vmem:[%s1254_s2 + $0x170] sm:$0xff] %v440_v26 }
 0x120   :  { %v350_v27 = vpop.f32.mrf.mxu0  ;;  %v442_v28 = vpop.f32.mrf.mxu1 }
 0x121   :  { %503 = vst [vmem:[%s1254_s2 + $0x80] sm:$0xff] %v350_v27  ;;  %534 = vst [vmem:[%s1254_s2 + $0x178] sm:$0xff] %v442_v28 }
 0x122   :  { %v352_v29 = vpop.f32.mrf.mxu0  ;;  %v446_v30 = vpop.f32.mrf.mxu1 }
 0x123   :  { %504 = vst [vmem:[%s1254_s2 + $0x88] sm:$0xff] %v352_v29  ;;  %535 = vst [vmem:[%s1254_s2 + $0x180] sm:$0xff] %v446_v30 }
 0x124   :  { %v356_v31 = vpop.f32.mrf.mxu0  ;;  %v448_v32 = vpop.f32.mrf.mxu1 }
 0x125   :  { %505 = vst [vmem:[%s1254_s2 + $0x90] sm:$0xff] %v356_v31  ;;  %536 = vst [vmem:[%s1254_s2 + $0x188] sm:$0xff] %v448_v32 }
 0x126   :  { %v358_v33 = vpop.f32.mrf.mxu0  ;;  %v452_v34 = vpop.f32.mrf.mxu1 }
 0x127   :  { %506 = vst [vmem:[%s1254_s2 + $0x98] sm:$0xff] %v358_v33  ;;  %537 = vst [vmem:[%s1254_s2 + $0x190] sm:$0xff] %v452_v34 }
 0x128   :  { %v362_v35 = vpop.f32.mrf.mxu0  ;;  %v454_v36 = vpop.f32.mrf.mxu1 }
 0x129   :  { %507 = vst [vmem:[%s1254_s2 + $0xa0] sm:$0xff] %v362_v35  ;;  %538 = vst [vmem:[%s1254_s2 + $0x198] sm:$0xff] %v454_v36 }
 0x12a   :  { %v364_v37 = vpop.f32.mrf.mxu0  ;;  %v458_v38 = vpop.f32.mrf.mxu1 }
 0x12b   :  { %508 = vst [vmem:[%s1254_s2 + $0xa8] sm:$0xff] %v364_v37  ;;  %539 = vst [vmem:[%s1254_s2 + $0x1a0] sm:$0xff] %v458_v38 }
 0x12c   :  { %v368_v39 = vpop.f32.mrf.mxu0  ;;  %v460_v40 = vpop.f32.mrf.mxu1 }
 0x12d   :  { %509 = vst [vmem:[%s1254_s2 + $0xb0] sm:$0xff] %v368_v39  ;;  %540 = vst [vmem:[%s1254_s2 + $0x1a8] sm:$0xff] %v460_v40 }
 0x12e   :  { %v370_v41 = vpop.f32.mrf.mxu0  ;;  %v464_v42 = vpop.f32.mrf.mxu1 }
 0x12f   :  { %510 = vst [vmem:[%s1254_s2 + $0xb8] sm:$0xff] %v370_v41  ;;  %541 = vst [vmem:[%s1254_s2 + $0x1b0] sm:$0xff] %v464_v42 }
 0x130   :  { %v374_v43 = vpop.f32.mrf.mxu0  ;;  %v466_v44 = vpop.f32.mrf.mxu1 }
 0x131   :  { %511 = vst [vmem:[%s1254_s2 + $0xc0] sm:$0xff] %v374_v43  ;;  %542 = vst [vmem:[%s1254_s2 + $0x1b8] sm:$0xff] %v466_v44 }
 0x132   :  { %v376_v45 = vpop.f32.mrf.mxu0  ;;  %v470_v46 = vpop.f32.mrf.mxu1 }
 0x133   :  { %512 = vst [vmem:[%s1254_s2 + $0xc8] sm:$0xff] %v376_v45  ;;  %543 = vst [vmem:[%s1254_s2 + $0x1c0] sm:$0xff] %v470_v46 }
 0x134   :  { %v380_v47 = vpop.f32.mrf.mxu0  ;;  %v472_v48 = vpop.f32.mrf.mxu1 }
 0x135   :  { %513 = vst [vmem:[%s1254_s2 + $0xd0] sm:$0xff] %v380_v47  ;;  %544 = vst [vmem:[%s1254_s2 + $0x1c8] sm:$0xff] %v472_v48 }
 0x136   :  { %v382_v49 = vpop.f32.mrf.mxu0  ;;  %v476_v50 = vpop.f32.mrf.mxu1 }
 0x137   :  { %514 = vst [vmem:[%s1254_s2 + $0xd8] sm:$0xff] %v382_v49  ;;  %545 = vst [vmem:[%s1254_s2 + $0x1d0] sm:$0xff] %v476_v50 }
 0x138   :  { %v386_v51 = vpop.f32.mrf.mxu0  ;;  %v478_v52 = vpop.f32.mrf.mxu1 }
 0x139   :  { %515 = vst [vmem:[%s1254_s2 + $0xe0] sm:$0xff] %v386_v51  ;;  %546 = vst [vmem:[%s1254_s2 + $0x1d8] sm:$0xff] %v478_v52 }
 0x13a   :  { %v388_v53 = vpop.f32.mrf.mxu0  ;;  %v482_v54 = vpop.f32.mrf.mxu1 }
 0x13b   :  { %516 = vst [vmem:[%s1254_s2 + $0xe8] sm:$0xff] %v388_v53  ;;  %547 = vst [vmem:[%s1254_s2 + $0x1e0] sm:$0xff] %v482_v54 }
 0x13c   :  { %v392_v55 = vpop.f32.mrf.mxu0  ;;  %v484_v56 = vpop.f32.mrf.mxu1 }
 0x13d   :  { %517 = vst [vmem:[%s1254_s2 + $0xf0] sm:$0xff] %v392_v55  ;;  %548 = vst [vmem:[%s1254_s2 + $0x1e8] sm:$0xff] %v484_v56 }
 0x13e   :  { %v394_v57 = vpop.f32.mrf.mxu0 }
 0x13f   :  { %518 = vst [vmem:[%s1254_s2 + $0xf8] sm:$0xff] %v394_v57 }

</bundles_post_ra>
